<compile_context>
chip_gen: v7x
topology: tpu7x:2x2x1
jax: 0.10.0
libtpu: 0.0.40
codegen_flags: <defaults>
</compile_context>

<pallas_src>
import math
from functools import lru_cache, partial

import jax
import jax.numpy as jnp
from jax.experimental import pallas as pl
from jax.experimental.pallas import tpu as pltpu


# ------------------------------ small helpers -------------------------------

def _pick_tile(dim, target, align):
    """Largest `align`-multiple divisor of `dim` that is <= target (or `dim`)."""
    if dim <= target:
        return dim
    t = (target // align) * align
    while t >= align:
        if dim % t == 0:
            return t
        t -= align
    # Pathological (no aligned divisor): fall back to the full dim.
    return dim


@lru_cache(maxsize=None)
def _vmem_limit_bytes():
    """Generation-aware scoped-VMEM limit (leave headroom for the compiler)."""
    try:
        cap = int(pltpu.get_tpu_info().vmem_capacity_bytes)
    except Exception:  # pragma: no cover - conservative fallback
        cap = 0
    if cap <= 0:
        cap = 128 * 1024 * 1024
    return min(cap * 3 // 4, 96 * 1024 * 1024)   # v7x(64MiB)->48MiB, v5e/v6e->96MiB


# ------------------------- tiled matmul (MXU, bf16) -------------------------

def _matmul_kernel(a_ref, b_ref, o_ref, acc_ref):
    @pl.when(pl.program_id(2) == 0)
    def _init():
        acc_ref[...] = jnp.zeros_like(acc_ref)

    acc_ref[...] += jnp.dot(a_ref[...], b_ref[...],
                            preferred_element_type=jnp.float32)

    @pl.when(pl.program_id(2) == pl.num_programs(2) - 1)
    def _store():
        o_ref[...] = acc_ref[...].astype(o_ref.dtype)


def pallas_matmul(a, b, out_dtype=None, tm=512, tn=512, tk=512):
    """a: (M, K) @ b: (K, N) -> (M, N), f32 accumulation in VMEM scratch."""
    M, K = a.shape
    K2, N = b.shape
    assert K == K2
    out_dtype = out_dtype or a.dtype
    tm = _pick_tile(M, tm, 8)      # sublane-aligned
    tn = _pick_tile(N, tn, 128)    # lane-aligned
    tk = _pick_tile(K, tk, 128)    # lane (A) / sublane (B) aligned
    grid = (M // tm, N // tn, K // tk)
    # TODO(synk): on v7x, pltpu.CORE_PARALLEL on the leading axis would split
    # the grid across the 2 TensorCores.
    return pl.pallas_call(
        _matmul_kernel,
        out_shape=jax.ShapeDtypeStruct((M, N), out_dtype),
        grid=grid,
        in_specs=[pl.BlockSpec((tm, tk), lambda i, j, k: (i, k)),
                  pl.BlockSpec((tk, tn), lambda i, j, k: (k, j))],
        out_specs=pl.BlockSpec((tm, tn), lambda i, j, k: (i, j)),
        scratch_shapes=[pltpu.VMEM((tm, tn), jnp.float32)],
        compiler_params=pltpu.CompilerParams(
            dimension_semantics=("parallel", "parallel", "arbitrary"),
            vmem_limit_bytes=_vmem_limit_bytes()),
    )(a, b)


# ----------------------------- fused RoPE (VPU) ------------------------------
# Inputs are in the "split-halves" head_dim layout produced by the permuted
# wq/wk weight columns: per head x = [x_even | x_odd].
#   out = [e*cos - o*sin | e*sin + o*cos]
# q is written HEAD-MAJOR (B, Hq, S, Hd) so the attention kernel can take
# (n_rep, S, Hd) blocks directly; k keeps its (B, S, Hkv, Hd) layout (the
# cache-update kernel does the head-major relayout while staging its DMA).

def _rope_qk_kernel(q_ref, k_ref, cs_ref, oq_ref, ok_ref):
    Hq = q_ref.shape[1]
    Hd = q_ref.shape[2]
    hd2 = Hd // 2
    c = cs_ref[:, :hd2]                      # (S, hd2) f32
    s = cs_ref[:, hd2:]

    # k: (S, Hkv, Hd) -> rotated, same layout; halves written separately.
    k = k_ref[...].astype(jnp.float32)
    ke, ko = k[:, :, :hd2], k[:, :, hd2:]
    cb, sb = c[:, None, :], s[:, None, :]
    ok_ref[:, :, :hd2] = (ke * cb - ko * sb).astype(ok_ref.dtype)
    ok_ref[:, :, hd2:] = (ke * sb + ko * cb).astype(ok_ref.dtype)

    # q: (S, Hq, Hd) -> rotated + written head-major into (Hq, S, Hd).  The
    # (S,H)->(H,S) relayout happens on-chip here (no XLA transpose in HBM).
    q = q_ref[...].astype(jnp.float32)
    for h in range(Hq):                      # static unroll over heads
        qe, qo = q[:, h, :hd2], q[:, h, hd2:]
        oq_ref[h, :, :hd2] = (qe * c - qo * s).astype(oq_ref.dtype)
        oq_ref[h, :, hd2:] = (qe * s + qo * c).astype(oq_ref.dtype)


def pallas_rope_qk(xq, xk, cos_sin):
    """xq: (B,S,Hq,Hd), xk: (B,S,Hkv,Hd); cos_sin: (S,Hd) packed [cos|sin] f32.

    Returns (q_rot (B,Hq,S,Hd), k_rot (B,S,Hkv,Hd)).
    """
    B, S, Hq, Hd = xq.shape
    Hkv = xk.shape[2]
    # TODO(synk): for long prefill, tile S via the grid instead of one
    # full-S block per batch element.
    return pl.pallas_call(
        _rope_qk_kernel,
        out_shape=(jax.ShapeDtypeStruct((B, Hq, S, Hd), xq.dtype),
                   jax.ShapeDtypeStruct((B, S, Hkv, Hd), xk.dtype)),
        grid=(B,),
        in_specs=[
            pl.BlockSpec((None, S, Hq, Hd), lambda b: (b, 0, 0, 0)),
            pl.BlockSpec((None, S, Hkv, Hd), lambda b: (b, 0, 0, 0)),
            pl.BlockSpec((S, Hd), lambda b: (0, 0)),
        ],
        out_specs=(
            pl.BlockSpec((None, Hq, S, Hd), lambda b: (b, 0, 0, 0)),
            pl.BlockSpec((None, S, Hkv, Hd), lambda b: (b, 0, 0, 0)),
        ),
        compiler_params=pltpu.CompilerParams(
            dimension_semantics=("parallel",)),
    )(xq, xk, cos_sin)


# --------------------- KV-cache append (aliased writeback) -------------------
# Cache layout: (max_batch, Hkv, max_seq, Hd).  The new (B, S, Hkv, Hd) slab is
# relaid out to head-major on-chip and DMA'd into the [start_pos, start_pos+S)
# window.  The cache is passed as an aliased input so the rest of it is kept
# without a full-cache copy (zero-copy under jit with buffer donation).

def _cache_update_kernel(new_ref, cache_in_ref, cache_out_ref, buf_ref, sems,
                         *, start_pos):
    del cache_in_ref                         # only needed for the alias
    b = pl.program_id(0)
    S, Hkv, _ = new_ref.shape
    new = new_ref[...]                       # (S, Hkv, Hd)
    for h in range(Hkv):                     # on-chip (S,H)->(H,S) relayout
        buf_ref[h] = new[:, h, :]
    copies = [
        pltpu.make_async_copy(buf_ref.at[h],
                              cache_out_ref.at[b, h, pl.ds(start_pos, S)],
                              sems.at[h])
        for h in range(Hkv)
    ]
    for cp in copies:
        cp.start()
    for cp in copies:
        cp.wait()


def pallas_cache_update(cache, new, start_pos):
    """cache: (max_b, Hkv, max_s, Hd); new: (B, S, Hkv, Hd); static start_pos."""
    _, Hkv, _, Hd = cache.shape
    B, S, _, _ = new.shape
    return pl.pallas_call(
        partial(_cache_update_kernel, start_pos=start_pos),
        out_shape=jax.ShapeDtypeStruct(cache.shape, cache.dtype),
        grid=(B,),
        in_specs=[
            pl.BlockSpec((None, S, Hkv, Hd), lambda b: (b, 0, 0, 0)),
            pl.BlockSpec(memory_space=pl.ANY),
        ],
        out_specs=pl.BlockSpec(memory_space=pl.ANY),
        scratch_shapes=[pltpu.VMEM((Hkv, S, Hd), cache.dtype),
                        pltpu.SemaphoreType.DMA((Hkv,))],
        input_output_aliases={1: 0},
        compiler_params=pltpu.CompilerParams(
            dimension_semantics=("arbitrary",),
            has_side_effects=True),
    )(new.astype(cache.dtype), cache)


# ---------------------- flash attention (MXU + VPU + EUP) --------------------
# Grid (B, Hkv, num_kv_tiles): each (b, g) step handles the n_rep query heads
# sharing KV head g; the KV axis is flash-tiled with online softmax in f32
# VMEM scratch.  1/sqrt(Hd) is folded into wq, so no in-kernel scale.

def _flash_attention_kernel(q_ref, k_ref, v_ref, o_ref, m_ref, l_ref, acc_ref,
                            *, kv_len, tkv):
    kv_idx = pl.program_id(2)

    @pl.when(kv_idx == 0)
    def _init():
        m_ref[...] = jnp.full(m_ref.shape, -jnp.inf, m_ref.dtype)
        l_ref[...] = jnp.zeros_like(l_ref)
        acc_ref[...] = jnp.zeros_like(acc_ref)

    n_rep, S, Hd = q_ref.shape
    rows = n_rep * S
    q = q_ref[...].reshape(rows, Hd)                       # (rows, Hd) bf16
    k = k_ref[...]                                         # (tkv, Hd)  bf16
    # scores = q @ k^T without an explicit transpose (contract dim 1 of both).
    s = jax.lax.dot_general(q, k, dimension_numbers=(((1,), (1,)), ((), ())),
                            preferred_element_type=jnp.float32)   # (rows, tkv)
    if kv_len % tkv != 0:  # static: only the ragged-tail case pays for masking
        col = kv_idx * tkv + jax.lax.broadcasted_iota(jnp.int32, s.shape, 1)
        s = jnp.where(col < kv_len, s, -jnp.inf)

    m_prev = m_ref[...]
    m_new = jnp.maximum(m_prev, jnp.max(s, axis=-1, keepdims=True))
    alpha = jnp.exp(m_prev - m_new)
    p = jnp.exp(s - m_new)
    l_ref[...] = alpha * l_ref[...] + jnp.sum(p, axis=-1, keepdims=True)
    acc_ref[...] = alpha * acc_ref[...] + jnp.dot(
        p.astype(v_ref.dtype), v_ref[...], preferred_element_type=jnp.float32)
    m_ref[...] = m_new

    @pl.when(kv_idx == pl.num_programs(2) - 1)
    def _finalize():
        inv_l = pl.reciprocal(l_ref[...], approx=True)     # EUP slot
        o_ref[...] = (acc_ref[...] * inv_l).reshape(n_rep, S, Hd).astype(o_ref.dtype)


def pallas_flash_attention(q, k_cache, v_cache, n_rep, kv_len, kv_tile=512):
    """q: (B, Hq, S, Hd); k_cache/v_cache: (max_b, Hkv, max_s, Hd) bf16.

    Attends the S query positions to cache positions [0, kv_len). No mask
    (matches the PyTorch reference).
    """
    B, Hq, S, Hd = q.shape
    _, Hkv, max_s, _ = k_cache.shape
    assert Hq == Hkv * n_rep
    rows = n_rep * S
    # KV tile: a multiple of 8 that divides max_s so the grid never reads past
    # the cache allocation; ragged kv_len is handled by in-kernel masking.
    tkv = _pick_tile(max_s, min(kv_tile, max_s), 8)
    nkv = pl.cdiv(kv_len, tkv)
    kernel = partial(_flash_attention_kernel, kv_len=kv_len, tkv=tkv)
    # TODO(synk): on v5e decode, pipeline_mode=pl.Buffered(3) on the K/V specs
    # if profiling shows exposed DMA; on v7x use pltpu.CORE_PARALLEL on B.
    return pl.pallas_call(
        kernel,
        out_shape=jax.ShapeDtypeStruct((B, Hq, S, Hd), q.dtype),
        grid=(B, Hkv, nkv),
        in_specs=[
            pl.BlockSpec((None, n_rep, S, Hd), lambda b, g, kv: (b, g, 0, 0)),
            pl.BlockSpec((None, None, tkv, Hd), lambda b, g, kv: (b, g, kv, 0)),
            pl.BlockSpec((None, None, tkv, Hd), lambda b, g, kv: (b, g, kv, 0)),
        ],
        out_specs=pl.BlockSpec((None, n_rep, S, Hd), lambda b, g, kv: (b, g, 0, 0)),
        scratch_shapes=[pltpu.VMEM((rows, 1), jnp.float32),
                        pltpu.VMEM((rows, 1), jnp.float32),
                        pltpu.VMEM((rows, Hd), jnp.float32)],
        compiler_params=pltpu.CompilerParams(
            dimension_semantics=("parallel", "parallel", "arbitrary"),
            vmem_limit_bytes=_vmem_limit_bytes()),
    )(q, k_cache, v_cache)


# ------------------------- SelfAttention (wrapper) --------------------------

class SelfAttentionPallas:
    def __init__(self, dim, n_heads, n_kv_heads, max_batch_size, max_seq_len,
                 key, kv_tile=512):
        self.n_kv_heads = n_heads if n_kv_heads is None else n_kv_heads
        self.n_heads_q = n_heads
        self.n_rep = self.n_heads_q // self.n_kv_heads
        self.head_dim = dim // n_heads
        self.kv_tile = kv_tile
        Hq, Hkv, Hd = self.n_heads_q, self.n_kv_heads, self.head_dim

        k1, k2, k3, k4 = jax.random.split(key, 4)
        # reference weights, stored (in, out) so y = x @ W  (PyTorch: y = x @ W.T)
        self.wq = 0.02 * jax.random.normal(k1, (dim, Hq * Hd), jnp.float32)
        self.wk = 0.02 * jax.random.normal(k2, (dim, Hkv * Hd), jnp.float32)
        self.wv = 0.02 * jax.random.normal(k3, (dim, Hkv * Hd), jnp.float32)
        self.wo = 0.02 * jax.random.normal(k4, (Hq * Hd, dim), jnp.float32)

        # Fold the RoPE pair de-interleave into the q/k weight column layout
        # (per head: even indices first, then odd).  A permutation of the
        # contracted head_dim applied to BOTH q and k leaves scores unchanged,
        # while RoPE becomes a simple split-halves op.
        half_perm = jnp.concatenate([jnp.arange(0, Hd, 2), jnp.arange(1, Hd, 2)])

        def permute_cols(w, n_h):
            cols = (jnp.arange(n_h)[:, None] * Hd + half_perm[None, :]).reshape(-1)
            return w[:, cols]

        wq_p = permute_cols(self.wq, Hq) * (1.0 / math.sqrt(Hd))  # fold 1/sqrt(Hd)
        wk_p = permute_cols(self.wk, Hkv)
        # fused QKV weight, bf16 for the MXU (f32 accumulation in-kernel)
        self.w_qkv = jnp.concatenate([wq_p, wk_p, self.wv], axis=1).astype(jnp.bfloat16)
        self.wo_bf16 = self.wo.astype(jnp.bfloat16)

        # KV cache, head-major (B, Hkv, max_seq, Hd) bf16 so the attention
        # kernel reads (tkv, Hd) tiles directly.
        # TODO(synk): the reference cache shape (max_batch, max_seq, head_dim)
        # drops the kv-head axis and cannot hold xk; using the intended 4D layout.
        self.cache_k = jnp.zeros((max_batch_size, Hkv, max_seq_len, Hd), jnp.bfloat16)
        self.cache_v = jnp.zeros((max_batch_size, Hkv, max_seq_len, Hd), jnp.bfloat16)

    def __call__(self, x, start_pos, cos_sin):
        B, S, D = x.shape
        Hq, Hkv, Hd = self.n_heads_q, self.n_kv_heads, self.head_dim

        # fused QKV projection (x read once from HBM)
        x2 = x.astype(jnp.bfloat16).reshape(B * S, D)
        qkv = pallas_matmul(x2, self.w_qkv, out_dtype=jnp.bfloat16)
        q_cols, kv_cols = Hq * Hd, Hkv * Hd
        xq = qkv[:, :q_cols].reshape(B, S, Hq, Hd)                      # no transpose
        xk = qkv[:, q_cols:q_cols + kv_cols].reshape(B, S, Hkv, Hd)
        xv = qkv[:, q_cols + kv_cols:].reshape(B, S, Hkv, Hd)

        # fused RoPE; q comes back head-major (B, Hq, S, Hd) — layout change
        # done inside the kernel instead of as an XLA transpose.
        xq, xk = pallas_rope_qk(xq, xk, cos_sin)

        # KV cache append (aliased Pallas writeback; no full-cache copy).
        self.cache_k = pallas_cache_update(self.cache_k, xk, start_pos)
        self.cache_v = pallas_cache_update(self.cache_v, xv, start_pos)

        kv_len = start_pos + S
        out = pallas_flash_attention(xq, self.cache_k, self.cache_v,
                                     self.n_rep, kv_len, kv_tile=self.kv_tile)

        # TODO(synk): with real head_dim (>=128) write the attention output
        # directly into (B, S, Hq*Hd) via a lane-dense out_spec and drop this
        # transpose.
        out2 = out.transpose(0, 2, 1, 3).reshape(B * S, Hq * Hd)
        y = pallas_matmul(out2, self.wo_bf16, out_dtype=jnp.float32)
        return y.reshape(B, S, D)


# ----------------------------- pure-JAX reference ---------------------------

def ref_forward(x, attn, start_pos, cos, sin, cache_k, cache_v):
    """Functional f32 reference with its own (max_b, max_s, Hkv, Hd) caches."""
    B, S, D = x.shape
    Hq, Hkv, Hd, n_rep = attn.n_heads_q, attn.n_kv_heads, attn.head_dim, attn.n_rep
    xq = (x.reshape(B * S, D) @ attn.wq).reshape(B, S, Hq, Hd)
    xk = (x.reshape(B * S, D) @ attn.wk).reshape(B, S, Hkv, Hd)
    xv = (x.reshape(B * S, D) @ attn.wv).reshape(B, S, Hkv, Hd)

    def rope(t):
        tp = t.reshape(*t.shape[:-1], -1, 2)
        te, to = tp[..., 0], tp[..., 1]
        c = cos[None, :, None, :]
        s = sin[None, :, None, :]
        return jnp.stack([te * c - to * s, te * s + to * c], axis=-1).reshape(t.shape)

    xq, xk = rope(xq), rope(xk)
    cache_k = jax.lax.dynamic_update_slice(cache_k, xk, (0, start_pos, 0, 0))
    cache_v = jax.lax.dynamic_update_slice(cache_v, xv, (0, start_pos, 0, 0))
    keys = jnp.repeat(cache_k[:B, :start_pos + S], n_rep, axis=2)
    values = jnp.repeat(cache_v[:B, :start_pos + S], n_rep, axis=2)
    q = xq.transpose(0, 2, 1, 3)
    k = keys.transpose(0, 2, 1, 3)
    v = values.transpose(0, 2, 1, 3)
    scores = jnp.einsum("bhqd,bhkd->bhqk", q, k) / math.sqrt(Hd)
    p = jax.nn.softmax(scores.astype(jnp.float32), axis=-1).astype(q.dtype)
    out = jnp.einsum("bhqk,bhkd->bhqd", p, v)
    out = out.transpose(0, 2, 1, 3).reshape(B, S, Hq * Hd)
    return out @ attn.wo, cache_k, cache_v


# ----------------------------------- main -----------------------------------

if __name__ == "__main__":
    # Small Llama-like config
    dim, n_heads, n_kv_heads = 64, 4, 2
    head_dim = dim // n_heads
    B = 2
    max_batch, max_seq = 4, 16

    key = jax.random.PRNGKey(0)
    kx1, kx2, kw = jax.random.split(key, 3)

    # kv_tile=8 at toy shapes so the second call exercises the multi-tile
    # flash (online-softmax) path; real models would use the default 512.
    attn = SelfAttentionPallas(dim, n_heads, n_kv_heads, max_batch, max_seq,
                               kw, kv_tile=8)

    inv_freq = 1.0 / (10000.0 ** (jnp.arange(0, head_dim, 2, dtype=jnp.float32)
                                  / head_dim))

    def angles_for(start, seqlen):
        t = jnp.arange(start, start + seqlen, dtype=jnp.float32)
        ang = jnp.outer(t, inv_freq)                     # (S, head_dim // 2)
        return jnp.cos(ang), jnp.sin(ang)

    # functional f32 reference cache
    ref_cache_k = jnp.zeros((max_batch, max_seq, n_kv_heads, head_dim), jnp.float32)
    ref_cache_v = jnp.zeros_like(ref_cache_k)

    # two calls: prefill at start_pos=0, then a second chunk appended at
    # start_pos=8 (exercises the non-zero-offset cache write and >1 KV tile).
    for step, (kx, start_pos, S) in enumerate([(kx1, 0, 8), (kx2, 8, 8)]):
        x = jax.random.normal(kx, (B, S, dim), jnp.float32)
        cos, sin = angles_for(start_pos, S)
        cos_sin = jnp.concatenate([cos, sin], axis=-1)   # (S, head_dim) packed

        out = jax.block_until_ready(attn(x, start_pos, cos_sin))
        ref, ref_cache_k, ref_cache_v = ref_forward(
            x, attn, start_pos, cos, sin, ref_cache_k, ref_cache_v)
        ref = jax.block_until_ready(ref)

        assert out.shape == (B, S, dim)
        err = float(jnp.max(jnp.abs(out - ref)))
        # bf16 MXU path + bf16 KV cache vs f32 reference -> loosened tolerance
        assert jnp.allclose(out, ref, rtol=3e-2, atol=5e-3), \
            f"step {step}: max abs err {err}"

    print("KERNEL_OK")
</pallas_src>

<mosaic_0001>
module attributes {stable_mosaic.version = 11 : i64} {
  func.func @_matmul_kernel(%arg0: i32, %arg1: i32, %arg2: i32, %arg3: memref<16x64xbf16, #tpu.memory_space<vmem>>, %arg4: memref<64x128xbf16, #tpu.memory_space<vmem>>, %arg5: memref<16x128xbf16, #tpu.memory_space<vmem>>, %arg6: memref<16x128xf32, #tpu.memory_space<vmem>>) attributes {dimension_semantics = [#tpu.dimension_semantics<parallel>, #tpu.dimension_semantics<parallel>, #tpu.dimension_semantics<arbitrary>], iteration_bounds = array<i64: 1, 1, 1>, scalar_prefetch = 0 : i64, scratch_operands = 1 : i64, tpu.core_type = #tpu.core_type<tc>, window_params = [{transform_indices = @transform_0, window_bounds = array<i64: 16, 64>}, {transform_indices = @transform_1, window_bounds = array<i64: 64, 128>}, {transform_indices = @transform_2, window_bounds = array<i64: 16, 128>}]} {
    %c0_i32 = arith.constant 0 : i32
    %0 = arith.cmpi eq, %arg2, %c0_i32 : i32
    %1 = arith.extui %0 : i1 to i32
    %c0_i32_0 = arith.constant 0 : i32
    %2 = arith.cmpi ne, %1, %c0_i32_0 : i32
    scf.if %2 {
      %cst_10 = arith.constant 0.000000e+00 : f32
      %12 = vector.broadcast %cst_10 : f32 to vector<16x128xf32>
      %c0_11 = arith.constant 0 : index
      %c0_12 = arith.constant 0 : index
      %13 = vector.load %arg6[%c0_11, %c0_12] : memref<16x128xf32, #tpu.memory_space<vmem>>, vector<16x128xf32>
      tpu.vector_store %arg6[%c0_11, %c0_12], %12 {strides = array<i32>} : memref<16x128xf32, #tpu.memory_space<vmem>>, vector<16x128xf32>,
    } else {
    }
    %c0 = arith.constant 0 : index
    %c0_1 = arith.constant 0 : index
    %3 = vector.load %arg6[%c0, %c0_1] : memref<16x128xf32, #tpu.memory_space<vmem>>, vector<16x128xf32>
    %c0_2 = arith.constant 0 : index
    %c0_3 = arith.constant 0 : index
    %4 = vector.load %arg3[%c0_2, %c0_3] : memref<16x64xbf16, #tpu.memory_space<vmem>>, vector<16x64xbf16>
    %c0_4 = arith.constant 0 : index
    %c0_5 = arith.constant 0 : index
    %5 = vector.load %arg4[%c0_4, %c0_5] : memref<64x128xbf16, #tpu.memory_space<vmem>>, vector<64x128xbf16>
    %cst = arith.constant dense<0.000000e+00> : vector<16x128xf32>
    %6 = tpu.matmul %4, %5, %cst {dimension_numbers = #tpu.dot_dimension_numbers<[1], [0], [0], [1], [0, 0, 1, 1], [], []>} : vector<16x64xbf16>, vector<64x128xbf16>, vector<16x128xf32> -> vector<16x128xf32>
    %7 = arith.addf %3, %6 : vector<16x128xf32>
    %c0_6 = arith.constant 0 : index
    %c0_7 = arith.constant 0 : index
    %8 = vector.load %arg6[%c0_6, %c0_7] : memref<16x128xf32, #tpu.memory_space<vmem>>, vector<16x128xf32>
    tpu.vector_store %arg6[%c0_6, %c0_7], %7 {strides = array<i32>} : memref<16x128xf32, #tpu.memory_space<vmem>>, vector<16x128xf32>,
    %c0_i32_8 = arith.constant 0 : i32
    %9 = arith.cmpi eq, %arg2, %c0_i32_8 : i32
    %10 = arith.extui %9 : i1 to i32
    %c0_i32_9 = arith.constant 0 : i32
    %11 = arith.cmpi ne, %10, %c0_i32_9 : i32
    scf.if %11 {
      %c0_10 = arith.constant 0 : index
      %c0_11 = arith.constant 0 : index
      %12 = vector.load %arg6[%c0_10, %c0_11] : memref<16x128xf32, #tpu.memory_space<vmem>>, vector<16x128xf32>
      %13 = arith.truncf %12 : vector<16x128xf32> to vector<16x128xbf16>
      %c0_12 = arith.constant 0 : index
      %c0_13 = arith.constant 0 : index
      %14 = vector.load %arg5[%c0_12, %c0_13] : memref<16x128xbf16, #tpu.memory_space<vmem>>, vector<16x128xbf16>
      tpu.vector_store %arg5[%c0_12, %c0_13], %13 {strides = array<i32>} : memref<16x128xbf16, #tpu.memory_space<vmem>>, vector<16x128xbf16>,
    } else {
    }
    return
  }
  func.func @transform_0(%arg0: i32, %arg1: i32, %arg2: i32) -> (i32, i32) {
    %c0_i32 = arith.constant 0 : i32
    return %arg0, %arg2 : i32, i32
  }
  func.func @transform_1(%arg0: i32, %arg1: i32, %arg2: i32) -> (i32, i32) {
    %c0_i32 = arith.constant 0 : i32
    return %arg2, %arg1 : i32, i32
  }
  func.func @transform_2(%arg0: i32, %arg1: i32, %arg2: i32) -> (i32, i32) {
    %c0_i32 = arith.constant 0 : i32
    return %arg0, %arg1 : i32, i32
  }
}

</mosaic_0001>

<bundles_post_ra>
// kernel: tpu_custom_call.1
= control target key start
LH: loop header
LB: loop body
LE: loop exit
PB: predicated region body
PF: predicated region fallthrough
CT: control target
= control target key end

     0   :  { %7 = vsyncpa [#allocation4], 0  ;;  %s353_s0 = inlined_call_operand.hbm [shape: bf16[16,64], index: 0, kind: input, shape index: {}]   ;;  %s354_s1 = inlined_call_operand.hbm [shape: bf16[64,128], index: 1, kind: input, shape index: {}]   ;;  %s355_s2 = inlined_call_operand.hbm [shape: bf16[16,128], index: 2, kind: output, shape index: {}]  }
   0x1   :  { %8 = vsyncpa [#allocation7], 0 }
   0x2   :  { %9 = vsyncpa [#allocation5], 0  ;;  %s286_s9 = smov [#allocation3]   ;;  %s214_s13 = scalar_lea.hbm %s353_s0, 128 }
   0x3   :  { %s15_s10 = sshll.u32 %s286_s9, 4  ;;  %p215_p0 = scmp.ne.s32.totalorder %s353_s0, %s214_s13  ;;  %s16_s10 = int_to_ptr.vmem [resolvable:$true] %s15_s10 }
   0x4   :  { %p218_p1 = scmp.lt.u32.totalorder %s214_s13, %s353_s0 }
   0x6   :  { %p220_p2 = pnand %p218_p1, %p215_p0 }
   0x8   :  { %223 = shalt.err (!%p220_p2)
}
   0x9   :  { %s224_s18 = scalar_lea.vmem %s16_s10, 128  ;;  %p229_p4 = scmp.lt.s32.totalorder %s16_s10, %s16_s10 }
   0xa   :  { %p225_p3 = scmp.ne.s32.totalorder %s16_s10, %s224_s18  ;;  %p230_p5 = scmp.lt.s32.totalorder %s224_s18, %s224_s18 }
   0xc   :  { %p231_p6 = por %p230_p5, %p229_p4 }
   0xe   :  { %p232_p7 = pnand %p231_p6, %p225_p3 }
  0x10   :  { %235 = shalt.err (!%p232_p7)
}
  0x11   :  { %s287_s19 = smov 64   ;;  %s288_s20 = smov 4  }
  0x12   :  { %21 = dma.hbm_to_vmem [thread:$0]  %s353_s0, 128, %s16_s10, [#allocation4], %s287_s19, %s287_s19, %s288_s20  }
  0x13   :  { %s289_s23 = smov [#allocation6]   ;;  %s236_s27 = scalar_lea.hbm %s354_s1, 512 }
  0x14   :  { %s27_s24 = sshll.u32 %s289_s23, 4  ;;  %p237_p8 = scmp.ne.s32.totalorder %s354_s1, %s236_s27  ;;  %s28_s24 = int_to_ptr.vmem [resolvable:$true] %s27_s24 }
  0x15   :  { %p240_p9 = scmp.lt.u32.totalorder %s236_s27, %s354_s1 }
  0x17   :  { %p242_p10 = pnand %p240_p9, %p237_p8 }
  0x19   :  { %245 = shalt.err (!%p242_p10)
}
  0x1a   :  { %s246_s4 = scalar_lea.vmem %s28_s24, 512  ;;  %p251_p12 = scmp.lt.s32.totalorder %s28_s24, %s28_s24 }
  0x1b   :  { %p247_p11 = scmp.ne.s32.totalorder %s28_s24, %s246_s4  ;;  %p252_p13 = scmp.lt.s32.totalorder %s246_s4, %s246_s4 }
  0x1d   :  { %p253_p0 = por %p252_p13, %p251_p12 }
  0x1f   :  { %p254_p1 = pnand %p253_p0, %p247_p11 }
  0x21   :  { %257 = shalt.err (!%p254_p1)
}
  0x22   :  { %33 = dma.hbm_to_vmem [thread:$0]  %s354_s1, 512, %s28_s24, [#allocation7], %s287_s19, %s287_s19, %s288_s20  }
  0x23   :  { %280 = dma.done.wait [#allocation4], 128  }
  0x24   :  { %281 = vsyncadd [#allocation4], 4294967168 }
  0x25   :  { %282 = dma.done.wait [#allocation7], 512  }
  0x26   :  { %283 = vsyncadd [#allocation7], 4294966784  ;;  %v290_v0 = vmov 0.0   ;;  %vm291_vm0 = vmmov 0   ;;  %v209_v1 = vld [vmem:[#allocation6] sm:$0xff]   ;;  %v210_v2 = vld [vmem:[#allocation6 + $0x8] sm:$0xff]  }
  0x27   :  { %190 = vmatprep.subr.bf16.mxu0 %v290_v0  ;;  %198 = vmatprep.mubr.msk.bf16.mxu0 %vm291_vm0, %v290_v0  ;;  %v211_v3 = vld [vmem:[#allocation6 + $0x10] sm:$0xff]   ;;  %v212_v4 = vld [vmem:[#allocation6 + $0x18] sm:$0xff]   ;;  %vm88_vm1 = vcmask 523264   ;;  %s292_s1 = smov [#allocation8]  }
  0x28   :  { %191 = vmatpush3.bf16.msra.mxu0 %v209_v1  ;;  %v213_v5 = vld [vmem:[#allocation3] sm:$0xff]   ;;  %s157_s6 = sshll.u32 %s292_s1, 4  ;;  %s158_s6 = int_to_ptr.vmem [resolvable:$true] %s157_s6 }
  0x29   :  { %192 = vmatprep.subr.bf16.mxu0 %v290_v0  ;;  %s258_s7 = scalar_lea.vmem %s158_s6, 128  ;;  %p263_p3 = scmp.lt.s32.totalorder %s158_s6, %s158_s6 }
  0x2a   :  { %p259_p2 = scmp.ne.s32.totalorder %s158_s6, %s258_s7  ;;  %p264_p4 = scmp.lt.s32.totalorder %s258_s7, %s258_s7 }
  0x2c   :  { %193 = vmatpush3.bf16.msra.mxu0 %v210_v2  ;;  %p265_p5 = por %p264_p4, %p263_p3 }
  0x2d   :  { %194 = vmatprep.subr.bf16.mxu0 %v290_v0 }
  0x2e   :  { %p266_p6 = pnand %p265_p5, %p259_p2 }
  0x30   :  { %195 = vmatpush3.bf16.msra.mxu0 %v211_v3 }
  0x31   :  { %196 = vmatprep.subr.bf16.mxu0 %v290_v0 }
  0x34   :  { %197 = vmatpush3.bf16.msra.mxu0 %v212_v4 }
  0x37   :  { %199 = vmatmul.mubr.msk.bf16.vlgmr.msra.gmra.mrb[0].mxu0 %vm88_vm1, %v213_v5 }
 0x10a   :  { %v126_v6 = vpop.f32.mrb[0].mxu0 }
 0x10b   :  { %v200_v7 = vpop.f32.mrb[1].mxu0 }
 0x10c   :  { %v129_v8 = vpop.f32.mrb[2].mxu0 }
 0x10d   :  { %v183_v9 = vpack.c.bf16 %v129_v8, %v126_v6  ;;  %v201_v10 = vpop.f32.mrb[3].mxu0 }
 0x10f   :  { %184 = vst [vmem:[#allocation8] sm:$0xff] %v183_v9  }
 0x110   :  { %269 = shalt.err (!%p266_p6)
}
 0x111   :  { %s270_s10 = scalar_lea.hbm %s355_s2, 128 }
 0x112   :  { %p271_p7 = scmp.ne.s32.totalorder %s355_s2, %s270_s10  ;;  %p274_p8 = scmp.lt.u32.totalorder %s270_s10, %s355_s2 }
 0x114   :  { %p276_p9 = pnand %p274_p8, %p271_p7 }
 0x116   :  { %279 = shalt.err (!%p276_p9)
}
 0x117   :  { %163 = dma.vmem_to_hbm [thread:$0]  %s158_s6, 128, %s355_s2, [#allocation5], %s287_s19, %s287_s19, %s288_s20  }
 0x118   :  { %284 = dma.done.wait [#allocation5], 128  }
 0x119   :  { %285 = vsyncadd [#allocation5], 4294967168 }
 0x11a   :  { %167 = vsyncpa [#allocation4], 1 }
 0x11b   :  { %168 = vsyncpa [#allocation7], 1 }
 0x11c   :  { %169 = vsyncpa [#allocation5], 1 }

</bundles_post_ra>
